<compile_context>
chip_gen: v5e
topology: v5e:2x2
jax: 0.10.0
libtpu: 0.0.40
codegen_flags: <defaults>
</compile_context>

<pallas_src>
import functools

import jax
import jax.numpy as jnp
from jax.experimental import pallas as pl
from jax.experimental.pallas import tpu as pltpu


def _round_up(x, m):
    return -(-x // m) * m


def _encoder_kernel(ids_ref, wf_ref, b_ref, out_ref, *, seq_len, batch_tile):
    # ids_ref: (batch_tile*seq_len, 1) int32  flattened token ids for this batch tile
    # wf_ref:  (V_pad, H_pad)                 fused table  emb_table @ weight.T (padded)
    # b_ref:   (1, H_pad)                     Linear bias (padded)
    # out_ref: (batch_tile, H_pad)            max-over-sequence of Linear(Embedding(x))
    ids = ids_ref[...]
    n_rows = batch_tile * seq_len
    v_pad = wf_ref.shape[0]
    h_pad = wf_ref.shape[1]

    # Embedding gather + Linear fused as a single one-hot matmul on the MXU.
    # Exactly one 1.0 per in-range row; padding_idx=0 ids select row 0 of the fused
    # table which is emb_table[0] @ W^T == 0 (row 0 of the embedding is zero).
    onehot = (ids == jax.lax.broadcasted_iota(jnp.int32, (n_rows, v_pad), 1)).astype(
        wf_ref.dtype
    )
    y = jnp.dot(onehot, wf_ref[...], preferred_element_type=jnp.float32)  # (n_rows, H_pad)

    # Segmented max over each length-L group of rows == max over the sequence axis.
    m = jnp.max(y.reshape(batch_tile, seq_len, h_pad), axis=1)            # (bt, H_pad)

    # Bias hoisted out of the (L, H) tile: max(y + b) == max(y) + b.
    out_ref[...] = (m + b_ref[...]).astype(out_ref.dtype)


def sentence_encoder_pallas(token_ids, emb_table, weight, bias, *, rows_per_program=4096):
    """token_ids: (B, L) int; emb_table: (V, H); weight: (H_out, H_in); bias: (H_out,)"""
    B, L = token_ids.shape
    V, H = emb_table.shape
    H_out = weight.shape[0]

    # Fuse Embedding and Linear once in the wrapper (tiny, O(V*H*H)):
    #   W_fused[v, :] = emb_table[v, :] @ W^T
    # NOTE: padding_idx=0 semantics rely on emb_table[0] == 0 (true for PyTorch weights).
    w_fused = emb_table @ weight.T                              # (V, H_out) f32

    # Lane-dense padding: contraction (vocab) axis and output axis both to 128.
    v_pad = _round_up(V, 128)
    h_pad = _round_up(H_out, 128)
    w_fused = jnp.pad(w_fused, ((0, v_pad - V), (0, h_pad - H_out)))
    b2 = jnp.pad(bias.reshape(1, H_out), ((0, 0), (0, h_pad - H_out)))

    # Batch tiling: feed the MXU tall matmuls while amortizing the ~0.35us/step cost.
    # For small B a single full-batch step keeps block shapes == array shapes (always
    # legal).  For large B, cap the tile at B//2 (multiple of 8) so v7x's two
    # TensorCores both get work, and pad B up to a tile multiple instead of shrinking
    # the tile for awkward/prime B.
    bt_target = max(1, rows_per_program // max(L, 1))
    if B >= 16:
        bt = min(bt_target, B // 2)
        bt = max(8, (bt // 8) * 8)                              # sublane-aligned out block
        b_pad = _round_up(B, bt)
    else:
        bt = B
        b_pad = B
    grid = (b_pad // bt,)

    ids = token_ids.astype(jnp.int32)
    if b_pad != B:
        ids = jnp.pad(ids, ((0, b_pad - B), (0, 0)))            # pad rows -> id 0, sliced off
    ids_flat = ids.reshape(b_pad * L, 1)

    kernel = functools.partial(_encoder_kernel, seq_len=L, batch_tile=bt)

    out = pl.pallas_call(
        kernel,
        out_shape=jax.ShapeDtypeStruct((b_pad, h_pad), jnp.float32),
        grid_spec=pltpu.PrefetchScalarGridSpec(
            num_scalar_prefetch=0,
            grid=grid,
            in_specs=[
                pl.BlockSpec((bt * L, 1), lambda i: (i, 0)),    # token ids for this tile
                pl.BlockSpec((v_pad, h_pad), lambda i: (0, 0)),  # fused table (VMEM-resident)
                pl.BlockSpec((1, h_pad), lambda i: (0, 0)),      # bias
            ],
            out_specs=pl.BlockSpec((bt, h_pad), lambda i: (i, 0)),
        ),
        compiler_params=pltpu.CompilerParams(
            dimension_semantics=("parallel",),                   # shard batch tiles across TCs
        ),
    )(ids_flat, w_fused, b2)

    return out[:B, :H_out]


def reference_forward(token_ids, emb_table, weight, bias):
    emb = jnp.take(emb_table, token_ids, axis=0)                 # (B, L, H)
    y = jnp.einsum("blh,oh->blo", emb, weight) + bias            # Linear: x @ W^T + b
    return jnp.max(y, axis=1)                                    # max over seq -> (B, H)


if __name__ == "__main__":
    # Small config consistent with the module: hidden_size=32, vocab_size=19 (+1), max_length=8
    B, L, H = 2, 8, 32
    vocab_size = 19
    V = vocab_size + 1

    key = jax.random.PRNGKey(0)
    k_emb, k_w, k_b, k_ids = jax.random.split(key, 4)

    emb_table = jax.random.normal(k_emb, (V, H), dtype=jnp.float32) * 0.1
    emb_table = emb_table.at[0].set(0.0)                         # padding_idx=0 -> zero row
    weight = jax.random.normal(k_w, (H, H), dtype=jnp.float32) * 0.1   # (out, in)
    bias = jax.random.normal(k_b, (H,), dtype=jnp.float32) * 0.1

    token_ids = jax.random.randint(k_ids, (B, L), 0, V, dtype=jnp.int32)

    out = sentence_encoder_pallas(token_ids, emb_table, weight, bias)
    out = jax.block_until_ready(out)

    ref = reference_forward(token_ids, emb_table, weight, bias)
    assert out.shape == (B, H)
    assert jnp.allclose(out, ref, atol=1e-5, rtol=1e-4), float(jnp.max(jnp.abs(out - ref)))

    print("KERNEL_OK")
</pallas_src>

<mosaic_0001>
module attributes {stable_mosaic.version = 11 : i64} {
  func.func @_encoder_kernel(%arg0: i32, %arg1: memref<16x1xi32, #tpu.memory_space<vmem>>, %arg2: memref<128x128xf32, #tpu.memory_space<vmem>>, %arg3: memref<1x128xf32, #tpu.memory_space<vmem>>, %arg4: memref<2x128xf32, #tpu.memory_space<vmem>>) attributes {dimension_semantics = [#tpu.dimension_semantics<parallel>], iteration_bounds = array<i64: 1>, scalar_prefetch = 0 : i64, scratch_operands = 0 : i64, tpu.core_type = #tpu.core_type<tc>, window_params = [{transform_indices = @transform_0, window_bounds = array<i64: 16, 1>}, {pipeline_mode = #tpu.pipeline_mode<synchronous>, transform_indices = @transform_1, window_bounds = array<i64: 128, 128>}, {pipeline_mode = #tpu.pipeline_mode<synchronous>, transform_indices = @transform_2, window_bounds = array<i64: 1, 128>}, {transform_indices = @transform_3, window_bounds = array<i64: 2, 128>}]} {
    %c0 = arith.constant 0 : index
    %c0_0 = arith.constant 0 : index
    %0 = vector.load %arg1[%c0, %c0_0] : memref<16x1xi32, #tpu.memory_space<vmem>>, vector<16x1xi32>
    %1 = tpu.iota {dimensions = array<i32: 1>} : vector<16x128xi32>
    %2 = vector.broadcast %0 : vector<16x1xi32> to vector<16x128xi32>
    %3 = arith.cmpi eq, %2, %1 : vector<16x128xi32>
    %4 = arith.extui %3 : vector<16x128xi1> to vector<16x128xi32>
    %5 = arith.sitofp %4 : vector<16x128xi32> to vector<16x128xf32>
    %c0_1 = arith.constant 0 : index
    %c0_2 = arith.constant 0 : index
    %6 = vector.load %arg2[%c0_1, %c0_2] : memref<128x128xf32, #tpu.memory_space<vmem>>, vector<128x128xf32>
    %cst = arith.constant dense<0.000000e+00> : vector<16x128xf32>
    %7 = tpu.matmul %5, %6, %cst {dimension_numbers = #tpu.dot_dimension_numbers<[1], [0], [0], [1], [0, 0, 1, 1], [], []>} : vector<16x128xf32>, vector<128x128xf32>, vector<16x128xf32> -> vector<16x128xf32>
    %8 = vector.shape_cast %7 : vector<16x128xf32> to vector<2x8x128xf32>
    %cst_3 = arith.constant dense<0xFF800000> : vector<2x128xf32>
    %9 = vector.multi_reduction <maximumf>, %8, %cst_3 [1] : vector<2x8x128xf32> to vector<2x128xf32>
    %c0_4 = arith.constant 0 : index
    %c0_5 = arith.constant 0 : index
    %10 = vector.load %arg3[%c0_4, %c0_5] : memref<1x128xf32, #tpu.memory_space<vmem>>, vector<1x128xf32>
    %11 = vector.broadcast %10 : vector<1x128xf32> to vector<2x128xf32>
    %12 = arith.addf %9, %11 : vector<2x128xf32>
    %c0_6 = arith.constant 0 : index
    %c0_7 = arith.constant 0 : index
    %13 = vector.load %arg4[%c0_6, %c0_7] : memref<2x128xf32, #tpu.memory_space<vmem>>, vector<2x128xf32>
    tpu.vector_store %arg4[%c0_6, %c0_7], %12 {strides = array<i32>} : memref<2x128xf32, #tpu.memory_space<vmem>>, vector<2x128xf32>,
    return
  }
  func.func @transform_0(%arg0: i32) -> (i32, i32) {
    %c0_i32 = arith.constant 0 : i32
    %c0_i32_0 = arith.constant 0 : i32
    return %arg0, %c0_i32 : i32, i32
  }
  func.func @transform_1(%arg0: i32) -> (i32, i32) {
    %c0_i32 = arith.constant 0 : i32
    %c0_i32_0 = arith.constant 0 : i32
    %c0_i32_1 = arith.constant 0 : i32
    return %c0_i32, %c0_i32_0 : i32, i32
  }
  func.func @transform_2(%arg0: i32) -> (i32, i32) {
    %c0_i32 = arith.constant 0 : i32
    %c0_i32_0 = arith.constant 0 : i32
    %c0_i32_1 = arith.constant 0 : i32
    return %c0_i32, %c0_i32_0 : i32, i32
  }
  func.func @transform_3(%arg0: i32) -> (i32, i32) {
    %c0_i32 = arith.constant 0 : i32
    %c0_i32_0 = arith.constant 0 : i32
    return %arg0, %c0_i32 : i32, i32
  }
}

</mosaic_0001>

<bundles_post_ra>
// kernel: tpu_custom_call.1
= control target key start
LH: loop header
LB: loop body
LE: loop exit
PB: predicated region body
PF: predicated region fallthrough
CT: control target
= control target key end

     0   :  { %8 = vsyncpa [#allocation3], 0  ;;  %s249_s0 = inlined_call_operand.vmem [shape: s32[16,1], index: 0, kind: input, shape index: {}]   ;;  %s250_s1 = inlined_call_operand.hbm [shape: f32[128,128], index: 1, kind: input, shape index: {}]   ;;  %s251_s2 = inlined_call_operand.vmem [shape: f32[1,128], index: 2, kind: input, shape index: {}]   ;;  %s252_s3 = inlined_call_operand.hbm [shape: f32[2,128], index: 3, kind: output, shape index: {}]  }
   0x1   :  { %9 = vsyncpa [#allocation4], 0  ;;  %s16_s14 = sshll.u32 %s250_s1, 4  ;;  %s208_s15 = smov [#allocation2]   ;;  %s17_s14 = int_to_ptr.hbm [resolvable:$true] %s16_s14 }
   0x2   :  { %s18_s16 = sshll.u32 %s208_s15, 4  ;;  %s209_s17 = smov 128   ;;  %s19_s16 = int_to_ptr.vmem [resolvable:$true] %s18_s16 }
   0x3   :  { %s210_s18 = smov 8  }
   0x4   :  { %24 = dma.hbm_to_vmem [thread:$0]  %s17_s14, 2048, %s19_s16, [#allocation3], %s209_s17, %s209_s17, %s210_s18  }
   0x5   :  { %204 = dma.done.wait [#allocation3], 2048  }
   0x6   :  { %205 = vsyncadd [#allocation3], 4294965248  ;;  %v211_v0 = vmov 0   ;;  %v32_v1 = vld [vmem:[%s249_s0 + $0x8] sm:$0xff]  ;;  %v62_v2 = vld [vmem:[#allocation2 + $0x78] sm:$0xff]  ;;  %v33_v19 = vlaneseq  ;;  %v212_v22 = vmov 1.0  }
   0x7   :  { %154 = vset.pattern.permute.xlu0 %v211_v0  ;;  %132 = vmatpush.msra.mxu1 %v62_v2  ;;  %v61_v3 = vld [vmem:[#allocation2 + $0x70] sm:$0xff]  ;;  %v60_v4 = vld [vmem:[#allocation2 + $0x68] sm:$0xff]  ;;  %v59_v5 = vld [vmem:[#allocation2 + $0x60] sm:$0xff]  ;;  %s213_s23 = smov [#allocation5]   ;;  %s118_s27 = sshll.u32 %s252_s3, 4  ;;  %vm107_vm2 = vcmask 1041409   ;;  %s119_s27 = int_to_ptr.hbm [resolvable:$true] %s118_s27 }
   0x8   :  { %39 = vperm.xlu0 %154, %v32_v1   ;;  %63 = vmatpush.msra.mxu0 %v62_v2  ;;  %v31_v6 = vld [vmem:[%s249_s0] sm:$0xff]  ;;  %v58_v7 = vld [vmem:[#allocation2 + $0x58] sm:$0xff]  ;;  %v57_v8 = vld [vmem:[#allocation2 + $0x50] sm:$0xff]  ;;  %v34_v20 = vand.u32 127, %v33_v19  ;;  %s116_s24 = sshll.u32 %s213_s23, 4  ;;  %s117_s24 = int_to_ptr.vmem [resolvable:$true] %s116_s24 }
   0x9   :  { %133 = vmatpush.msra.mxu1 %v61_v3  ;;  %v56_v9 = vld [vmem:[#allocation2 + $0x48] sm:$0xff]  ;;  %v55_v10 = vld [vmem:[#allocation2 + $0x40] sm:$0xff]  ;;  %v54_v11 = vld [vmem:[#allocation2 + $0x38] sm:$0xff] }
   0xa   :  { %64 = vmatpush.msra.mxu0 %v61_v3  ;;  %v53_v12 = vld [vmem:[#allocation2 + $0x30] sm:$0xff]  ;;  %v52_v13 = vld [vmem:[#allocation2 + $0x28] sm:$0xff]  ;;  %v51_v14 = vld [vmem:[#allocation2 + $0x20] sm:$0xff] }
   0xb   :  { %134 = vmatpush.msra.mxu1 %v60_v4  ;;  %v50_v15 = vld [vmem:[#allocation2 + $0x18] sm:$0xff]  ;;  %v49_v16 = vld [vmem:[#allocation2 + $0x10] sm:$0xff]  ;;  %v48_v17 = vld [vmem:[#allocation2 + $0x8] sm:$0xff] }
   0xc   :  { %65 = vmatpush.msra.mxu0 %v60_v4  ;;  %v47_v18 = vld [vmem:[#allocation2] sm:$0xff] }
   0xd   :  { %135 = vmatpush.msra.mxu1 %v59_v5  ;;  %v155_v34 = vld [vmem:[%s251_s2] ss:$0 sm:$0xff] }
   0xe   :  { %66 = vmatpush.msra.mxu0 %v59_v5 }
   0xf   :  { %136 = vmatpush.msra.mxu1 %v58_v7 }
  0x10   :  { %36 = vperm.xlu0 %154, %v31_v6   ;;  %67 = vmatpush.msra.mxu0 %v58_v7 }
  0x11   :  { %137 = vmatpush.msra.mxu1 %v57_v8 }
  0x12   :  { %68 = vmatpush.msra.mxu0 %v57_v8 }
  0x13   :  { %138 = vmatpush.msra.mxu1 %v56_v9 }
  0x14   :  { %69 = vmatpush.msra.mxu0 %v56_v9 }
  0x15   :  { %139 = vmatpush.msra.mxu1 %v55_v10 }
  0x16   :  { %70 = vmatpush.msra.mxu0 %v55_v10 }
  0x17   :  { %140 = vmatpush.msra.mxu1 %v54_v11 }
  0x18   :  { %71 = vmatpush.msra.mxu0 %v54_v11 }
  0x19   :  { %141 = vmatpush.msra.mxu1 %v53_v12 }
  0x1a   :  { %72 = vmatpush.msra.mxu0 %v53_v12 }
  0x1b   :  { %142 = vmatpush.msra.mxu1 %v52_v13 }
  0x1c   :  { %73 = vmatpush.msra.mxu0 %v52_v13 }
  0x1d   :  { %143 = vmatpush.msra.mxu1 %v51_v14 }
  0x1e   :  { %74 = vmatpush.msra.mxu0 %v51_v14 }
  0x1f   :  { %144 = vmatpush.msra.mxu1 %v50_v15 }
  0x20   :  { %75 = vmatpush.msra.mxu0 %v50_v15 }
  0x21   :  { %145 = vmatpush.msra.mxu1 %v49_v16 }
  0x22   :  { %76 = vmatpush.msra.mxu0 %v49_v16 }
  0x23   :  { %146 = vmatpush.msra.mxu1 %v48_v17 }
  0x24   :  { %77 = vmatpush.msra.mxu0 %v48_v17 }
  0x25   :  { %147 = vmatpush.msra.mxu1 %v47_v18 }
  0x26   :  { %78 = vmatpush.msra.mxu0 %v47_v18 }
  0x7a   :  { %v40_v21 = vpop.permute.xlu0 %39 }
  0x7b   :  { %vm42_vm0 = vcmp.eq.s32.totalorder %v40_v21, %v34_v20 }
  0x7c   :  { %131 = vmatmul.msk.f32.vlgmr.msra.gmra.mxu1 %vm42_vm0, %v212_v22 }
  0x82   :  { %v37_v23 = vpop.permute.xlu0 %36 }
  0x83   :  { %vm41_vm1 = vcmp.eq.s32.totalorder %v37_v23, %v34_v20 }
  0x84   :  { %130 = vmatmul.msk.f32.vlgmr.msra.gmra.mxu0 %vm41_vm1, %v212_v22 }
  0xf9   :  { %v83_v24 = vpop.f32.mrf.mxu1 }
  0xfa   :  { %v92_v25 = vrot.slane %v83_v24, 4 }
  0xfc   :  { %v93_v26 = vmax.f32 %v83_v24, %v92_v25 }
  0xfe   :  { %v94_v27 = vrot.slane %v93_v26, 2 }
 0x100   :  { %v95_v28 = vmax.f32 %v93_v26, %v94_v27 }
 0x101   :  { %v80_v29 = vpop.f32.mrf.mxu0 }
 0x102   :  { %v96_v30 = vrot.slane %v95_v28, 1  ;;  %v86_v31 = vrot.slane %v80_v29, 4 }
 0x104   :  { %v87_v32 = vmax.f32 %v80_v29, %v86_v31  ;;  %v97_v33 = vmax.f32 %v95_v28, %v96_v30 }
 0x106   :  { %v88_v35 = vrot.slane %v87_v32, 2  ;;  %v103_v37 = vadd.f32 %v155_v34, %v97_v33 }
 0x108   :  { %v89_v36 = vmax.f32 %v87_v32, %v88_v35  ;;  %v106_v40 = vrot.slane %v103_v37, 7 }
 0x10a   :  { %v90_v38 = vrot.slane %v89_v36, 1 }
 0x10c   :  { %v91_v39 = vmax.f32 %v89_v36, %v90_v38 }
 0x10e   :  { %v102_v41 = vadd.f32 %v155_v34, %v91_v39 }
 0x110   :  { %v108_v42 = vsel %vm107_vm2, %v106_v40, %v102_v41 }
 0x111   :  { %110 = vst [vmem:[#allocation5] sm:$0x3] %v108_v42 }
 0x112   :  { %121 = dma.vmem_to_hbm [thread:$0]  %s117_s24, 32, %s119_s27, [#allocation4]  }
 0x113   :  { %206 = dma.done.wait [#allocation4], 32  }
 0x114   :  { %207 = vsyncadd [#allocation4], 4294967264 }
 0x115   :  { %126 = vsyncpa [#allocation3], 1 }
 0x116   :  { %127 = vsyncpa [#allocation4], 1 }

</bundles_post_ra>
